<compile_context>
chip_gen: v5e
topology: v5e:2x2
jax: 0.10.0
libtpu: 0.0.40
codegen_flags: <defaults>
</compile_context>

<pallas_src>
import functools

import jax
import jax.numpy as jnp
from jax import lax
from jax.experimental import pallas as pl
from jax.experimental.pallas import tpu as pltpu

_LANES = 128            # vreg lane width: keep the output lane-dense
_SUBLANES = 8           # sublane granularity for f32
_MAX_TILE_ROWS = 2048   # 2048 rows x 128 lanes x 4B = 1 MiB output tile
_BITS = 24              # random bits kept per element (prob quantized to 2^-24)
_BITS_MASK = (1 << _BITS) - 1
_GOLD_I32 = -1640531527  # 0x9E3779B9 as signed int32 (golden-ratio constant)


def _ceil_div(a, b):
    return -(-a // b)


def _round_up(a, b):
    return _ceil_div(a, b) * b


# --------------------------------------------------------------------------
# Pallas kernel: fill one (tile_rows, 128) slab with Bernoulli(p) samples
# --------------------------------------------------------------------------
def _bernoulli_kernel(seed_ref, thr_ref, o_ref, *, tile_rows, use_hw_prng):
    # seed_ref: SMEM (1,) int32  -- base seed
    # thr_ref : SMEM (1,) int32  -- integer threshold in [0, 2^24]
    # o_ref   : VMEM (tile_rows, 128) float32 -- lane-dense output slab
    pid = pl.program_id(0)
    thr = thr_ref[0]

    if use_hw_prng:
        # Hardware PRNG path (TPU Mosaic backend only).  Mix program_id into
        # the seed with a multiplicative hash so adjacent tiles do not get
        # adjacent (potentially correlated) seeds.  int32 wraparound is fine.
        mixed = seed_ref[0] ^ (pid * jnp.int32(_GOLD_I32))
        pltpu.prng_seed(mixed)
        raw = pltpu.prng_random_bits(o_ref.shape)
        # NOTE: keep random-bit generation and consumption in one chain so the
        # bits never materialize as a VMEM temporary (perf review #6).
        bits = jnp.bitwise_and(pltpu.bitcast(raw, jnp.int32),
                               jnp.int32(_BITS_MASK))
    else:
        # Portable counter-based hash (lowbias32) over the global element
        # index; plain jnp integer ops so it lowers on any backend
        # (including the CPU interpret check) and is tiling-invariant.
        row = lax.broadcasted_iota(jnp.int32, o_ref.shape, 0)
        col = lax.broadcasted_iota(jnp.int32, o_ref.shape, 1)
        idx = (pid * jnp.int32(tile_rows) + row) * jnp.int32(_LANES) + col
        x = idx.astype(jnp.uint32) + (seed_ref[0].astype(jnp.uint32)
                                      * jnp.uint32(0x9E3779B9))
        x = x ^ (x >> 16)
        x = x * jnp.uint32(0x7FEB352D)
        x = x ^ (x >> 15)
        x = x * jnp.uint32(0x846CA68B)
        x = x ^ (x >> 16)
        bits = jnp.bitwise_and(x, jnp.uint32(_BITS_MASK)).astype(jnp.int32)

    # bits is uniform on [0, 2^24); P(bits < thr) == thr / 2^24.
    o_ref[...] = (bits < thr).astype(jnp.float32)


@functools.partial(jax.jit, static_argnames=("size", "use_hw_prng"))
def _bernoulli_sample(seed_arr, prob_arr, size, use_hw_prng):
    """Draw Bernoulli(prob) samples of the given (static) size via Pallas."""
    total = 1
    for d in size:
        total *= int(d)
    total = max(int(total), 1)

    rows = _round_up(_ceil_div(total, _LANES), _SUBLANES)
    grid_n = max(1, _ceil_div(rows, _MAX_TILE_ROWS))
    if rows > _MAX_TILE_ROWS:
        grid_n = max(grid_n, 2)  # keep both v7x TensorCores busy
    tile_rows = _round_up(_ceil_div(rows, grid_n), _SUBLANES)
    rows_padded = tile_rows * grid_n

    # Integer threshold: probability is quantized to multiples of 2^-24, and
    # p=0 -> thr=0 (all zeros), p=1 -> thr=2^24 (all ones) hold exactly.
    p = prob_arr.reshape(-1)[:1].astype(jnp.float32)
    thr = jnp.clip(jnp.round(p * float(1 << _BITS)),
                   0.0, float(1 << _BITS)).astype(jnp.int32)
    seed = seed_arr.reshape(-1)[:1].astype(jnp.int32)

    kernel = functools.partial(_bernoulli_kernel,
                               tile_rows=tile_rows,
                               use_hw_prng=use_hw_prng)

    slab = pl.pallas_call(
        kernel,
        out_shape=jax.ShapeDtypeStruct((rows_padded, _LANES), jnp.float32),
        grid=(grid_n,),
        in_specs=[
            pl.BlockSpec(memory_space=pltpu.MemorySpace.SMEM),  # seed
            pl.BlockSpec(memory_space=pltpu.MemorySpace.SMEM),  # threshold
        ],
        out_specs=pl.BlockSpec((tile_rows, _LANES), lambda i: (i, 0)),
        compiler_params=pltpu.CompilerParams(
            dimension_semantics=("parallel",),
        ),
    )(seed, thr)

    if rows_padded * _LANES == total:
        # No padding: hand the lane-dense slab straight back (no extra HBM pass).
        return slab.reshape(size)
    return slab.reshape(-1)[:total].reshape(size)


# --------------------------------------------------------------------------
# Module wrapper mirroring the PyTorch Bernoulli(Distribution) interface
# --------------------------------------------------------------------------
class Bernoulli:
    def __init__(self, prob: float = 0.5, do_rsample: bool = False):
        self.prob = jnp.asarray(prob, dtype=jnp.float32).reshape(-1)[:1]
        self.do_rsample = do_rsample

    def forward(self, size=1, device=None, seed: int = 0):
        del device  # samples always live on the default (TPU) backend
        if self.do_rsample:
            # TODO(synk): rsample path is NotImplemented in the reference too.
            raise NotImplementedError
        if not hasattr(size, "__getitem__"):
            size = (size,)
        size = tuple(int(s) for s in size)
        seed_arr = jnp.asarray([int(seed) & 0x7FFFFFFF], dtype=jnp.int32)

        use_hw = jax.default_backend() == "tpu"
        try:
            return _bernoulli_sample(seed_arr, self.prob, size=size,
                                     use_hw_prng=use_hw)
        except Exception:
            if not use_hw:
                raise
            # Fallback for environments where the hardware PRNG primitives
            # cannot be lowered (e.g. forced interpret mode).
            return _bernoulli_sample(seed_arr, self.prob, size=size,
                                     use_hw_prng=False)

    __call__ = forward

    def copy(self, do_rsample=None):
        if do_rsample is None:
            do_rsample = self.do_rsample
        return Bernoulli(prob=float(self.prob[0]), do_rsample=do_rsample)

    def get_distribution_parameters(self):
        return {"prob": self.prob}

    def __repr__(self):
        return f"Bernoulli(prob={self.prob.tolist()!r}, do_rsample={self.do_rsample})"


# --------------------------------------------------------------------------
if __name__ == "__main__":
    key = jax.random.PRNGKey(0)
    seed = int(jax.random.randint(key, (), 0, 2**31 - 16, dtype=jnp.int32))

    size = (2, 4, 16, 16)
    dist = Bernoulli(prob=0.5, do_rsample=False)
    out = jax.block_until_ready(dist.forward(size=size, seed=seed))

    assert out.shape == size, out.shape
    assert out.dtype == jnp.float32
    assert bool(jnp.all((out == 0.0) | (out == 1.0)))
    m = float(out.mean())
    assert 0.3 < m < 0.7, m  # 2048 coin flips; mean must be near 0.5

    # edge cases: p=0 -> all zeros, p=1 -> all ones; scalar / tuple sizes
    out0 = jax.block_until_ready(Bernoulli(prob=0.0).forward(size=(3, 7), seed=seed + 1))
    out1 = jax.block_until_ready(Bernoulli(prob=1.0).forward(size=17, seed=seed + 2))
    assert out0.shape == (3, 7) and bool(jnp.all(out0 == 0.0))
    assert out1.shape == (17,) and bool(jnp.all(out1 == 1.0))

    print("KERNEL_OK")
</pallas_src>

<mosaic_0001>
module attributes {stable_mosaic.version = 11 : i64} {
  func.func @_bernoulli_kernel(%arg0: i32, %arg1: memref<1xi32, #tpu.memory_space<smem>>, %arg2: memref<1xi32, #tpu.memory_space<smem>>, %arg3: memref<16x128xf32, #tpu.memory_space<vmem>>) attributes {dimension_semantics = [#tpu.dimension_semantics<parallel>], iteration_bounds = array<i64: 1>, scalar_prefetch = 0 : i64, scratch_operands = 0 : i64, tpu.core_type = #tpu.core_type<tc>, window_params = [{transform_indices = @transform_0, window_bounds = array<i64: 1>}, {transform_indices = @transform_1, window_bounds = array<i64: 1>}, {transform_indices = @transform_2, window_bounds = array<i64: 16, 128>}]} {
    %c0 = arith.constant 0 : index
    %0 = memref.load %arg2[%c0] : memref<1xi32, #tpu.memory_space<smem>>
    %1 = tpu.iota {dimensions = array<i32: 0>} : vector<16x128xi32>
    %2 = tpu.iota {dimensions = array<i32: 1>} : vector<16x128xi32>
    %c16_i32 = arith.constant 16 : i32
    %3 = arith.muli %arg0, %c16_i32 : i32
    %4 = vector.broadcast %3 : i32 to vector<16x128xi32>
    %5 = arith.addi %4, %1 : vector<16x128xi32>
    %c128_i32 = arith.constant 128 : i32
    %6 = vector.broadcast %c128_i32 : i32 to vector<16x128xi32>
    %7 = arith.muli %5, %6 : vector<16x128xi32>
    %8 = arith.addi %7, %2 : vector<16x128xi32>
    %c0_0 = arith.constant 0 : index
    %9 = memref.load %arg1[%c0_0] : memref<1xi32, #tpu.memory_space<smem>>
    %c-1640531527_i32 = arith.constant -1640531527 : i32
    %10 = arith.muli %9, %c-1640531527_i32 : i32
    %11 = vector.broadcast %10 : i32 to vector<16x128xi32>
    %12 = arith.addi %8, %11 : vector<16x128xi32>
    %c16_i32_1 = arith.constant 16 : i32
    %13 = vector.broadcast %c16_i32_1 : i32 to vector<16x128xi32>
    %14 = arith.shrui %12, %13 : vector<16x128xi32>
    %15 = arith.xori %12, %14 : vector<16x128xi32>
    %c2146121005_i32 = arith.constant 2146121005 : i32
    %16 = vector.broadcast %c2146121005_i32 : i32 to vector<16x128xi32>
    %17 = arith.muli %15, %16 : vector<16x128xi32>
    %c15_i32 = arith.constant 15 : i32
    %18 = vector.broadcast %c15_i32 : i32 to vector<16x128xi32>
    %19 = arith.shrui %17, %18 : vector<16x128xi32>
    %20 = arith.xori %17, %19 : vector<16x128xi32>
    %c-2073254261_i32 = arith.constant -2073254261 : i32
    %21 = vector.broadcast %c-2073254261_i32 : i32 to vector<16x128xi32>
    %22 = arith.muli %20, %21 : vector<16x128xi32>
    %c16_i32_2 = arith.constant 16 : i32
    %23 = vector.broadcast %c16_i32_2 : i32 to vector<16x128xi32>
    %24 = arith.shrui %22, %23 : vector<16x128xi32>
    %25 = arith.xori %22, %24 : vector<16x128xi32>
    %c16777215_i32 = arith.constant 16777215 : i32
    %26 = vector.broadcast %c16777215_i32 : i32 to vector<16x128xi32>
    %27 = arith.andi %25, %26 : vector<16x128xi32>
    %28 = vector.broadcast %0 : i32 to vector<16x128xi32>
    %29 = arith.cmpi slt, %27, %28 : vector<16x128xi32>
    %30 = arith.extui %29 : vector<16x128xi1> to vector<16x128xi32>
    %31 = arith.sitofp %30 : vector<16x128xi32> to vector<16x128xf32>
    %c0_3 = arith.constant 0 : index
    %c0_4 = arith.constant 0 : index
    %32 = vector.load %arg3[%c0_3, %c0_4] : memref<16x128xf32, #tpu.memory_space<vmem>>, vector<16x128xf32>
    tpu.vector_store %arg3[%c0_3, %c0_4], %31 {strides = array<i32>} : memref<16x128xf32, #tpu.memory_space<vmem>>, vector<16x128xf32>,
    return
  }
  func.func @transform_0(%arg0: i32) -> i32 {
    %c0_i32 = arith.constant 0 : i32
    %c0_i32_0 = arith.constant 0 : i32
    return %c0_i32 : i32
  }
  func.func @transform_1(%arg0: i32) -> i32 {
    %c0_i32 = arith.constant 0 : i32
    %c0_i32_0 = arith.constant 0 : i32
    return %c0_i32 : i32
  }
  func.func @transform_2(%arg0: i32) -> (i32, i32) {
    %c0_i32 = arith.constant 0 : i32
    %c0_i32_0 = arith.constant 0 : i32
    return %arg0, %c0_i32 : i32, i32
  }
}

</mosaic_0001>

<bundles_post_ra>
// kernel: _bernoulli_sample.1
= control target key start
LH: loop header
LB: loop body
LE: loop exit
PB: predicated region body
PF: predicated region fallthrough
CT: control target
= control target key end

     0   :  { %v14_v0 = vlaneseq  ;;  %v66_v30 = vmov 0.0   ;;  %s94_s0 = inlined_call_operand.<no memory space> [shape: s32[1], index: 0, kind: input, shape index: {}]   ;;  %s95_s1 = inlined_call_operand.<no memory space> [shape: s32[1], index: 1, kind: input, shape index: {}]   ;;  %s96_s2 = inlined_call_operand.vmem [shape: f32[16,128], index: 2, kind: output, shape index: {}]  }
   0x1   :  { %s28_s11 = smul.u32 2654435769, %s94_s0  ;;  %v50_v26 = vstv %s95_s1 }
   0x2   :  { %v15_v1 = vshrl.u32 %v14_v0, 7  ;;  %v18_v2 = vand.u32 127, %v14_v0 }
   0x3   :  { %v29_v5 = vstv %s28_s11 }
   0x4   :  { %v23_v3 = vmul.u32 128, %v15_v1  ;;  %v16_v4 = vadd.s32 8, %v15_v1 }
   0x6   :  { %v25_v6 = vadd.s32 %v23_v3, %v18_v2  ;;  %v24_v7 = vmul.u32 128, %v16_v4 }
   0x8   :  { %v30_v8 = vadd.s32 %v29_v5, %v25_v6  ;;  %v26_v9 = vadd.s32 %v24_v7, %v18_v2 }
   0xa   :  { %v32_v10 = vshrl.u32 %v30_v8, 16  ;;  %v31_v11 = vadd.s32 %v29_v5, %v26_v9 }
   0xc   :  { %v34_v12 = vxor.u32 %v32_v10, %v30_v8  ;;  %v33_v13 = vshrl.u32 %v31_v11, 16 }
   0xe   :  { %v36_v14 = vmul.u32 2146121005, %v34_v12  ;;  %v35_v15 = vxor.u32 %v33_v13, %v31_v11 }
  0x10   :  { %v38_v16 = vshrl.u32 %v36_v14, 15  ;;  %v37_v17 = vmul.u32 2146121005, %v35_v15 }
  0x12   :  { %v40_v18 = vxor.u32 %v38_v16, %v36_v14  ;;  %v39_v19 = vshrl.u32 %v37_v17, 15 }
  0x14   :  { %v42_v20 = vmul.u32 2221713035, %v40_v18  ;;  %v41_v21 = vxor.u32 %v39_v19, %v37_v17 }
  0x16   :  { %v44_v22 = vshrl.u32 %v42_v20, 16  ;;  %v43_v23 = vmul.u32 2221713035, %v41_v21 }
  0x18   :  { %v46_v24 = vxor.u32 %v44_v22, %v42_v20  ;;  %v45_v25 = vshrl.u32 %v43_v23, 16 }
  0x1a   :  { %v48_v27 = vand.u32 16777215, %v46_v24  ;;  %v47_v28 = vxor.u32 %v45_v25, %v43_v23 }
  0x1c   :  { %vm51_vm0 = vcmp.lt.s32.totalorder %v48_v27, %v50_v26  ;;  %v49_v29 = vand.u32 16777215, %v47_v28 }
  0x1d   :  { %v63_v31 = vsel %vm51_vm0, 1.0, %v66_v30 }
  0x1e   :  { %57 = vst [vmem:[%s96_s2] sm:$0xff] %v63_v31  ;;  %vm52_vm1 = vcmp.lt.s32.totalorder %v49_v29, %v50_v26 }
  0x1f   :  { %v64_v32 = vsel %vm52_vm1, 1.0, %v66_v30 }
  0x20   :  { %58 = vst [vmem:[%s96_s2 + $0x8] sm:$0xff] %v64_v32 }

</bundles_post_ra>
